<compile_context>
chip_gen: v7x
topology: tpu7x:2x2x1
jax: 0.10.0
libtpu: 0.0.40
codegen_flags: <defaults>
</compile_context>

<pallas_src>
import jax
import jax.numpy as jnp
from jax.experimental import pallas as pl
from jax.experimental.pallas import tpu as pltpu


def _largest_divisor_at_most(n, cap):
    for d in range(min(n, cap), 0, -1):
        if n % d == 0:
            return d
    return 1


def _make_l1_masked_kernel(S, S_TILE, T, Bb, CHUNK, NFULL, REM, A, needs_tail):
    """Kernel body for a given static tiling."""

    def kernel(y_ref, g_ref, m_ref, out_ref, acc_ref):
        # grid = (B//Bb, T); axis 0 = batch blocks (parallel), axis 1 = reduction.
        t = pl.program_id(1)

        @pl.when(t == 0)
        def _init():
            acc_ref[...] = jnp.zeros_like(acc_ref)

        def slab(bl, row0, rows, apply_tail, num_acc, den_acc):
            # Cast per-slab: inputs stay in native dtype in HBM/VMEM buffers.
            y = y_ref[bl, pl.ds(row0, rows), :].astype(jnp.float32)
            g = g_ref[bl, pl.ds(row0, rows), :].astype(jnp.float32)
            m = m_ref[bl, pl.ds(row0, rows), :].astype(jnp.float32)
            diff = jnp.abs(y * m - g * m)  # exact PyTorch form (mask may be signed)
            den = m
            if apply_tail:
                # Rows past the true length S in the last tile are Pallas
                # edge-pad (unspecified); drop them from both sums.
                rows_left = (S - t * S_TILE) - row0
                rid = jax.lax.broadcasted_iota(jnp.int32, (rows, 128), 0)
                valid = rid < rows_left
                diff = jnp.where(valid, diff, 0.0)
                den = jnp.where(valid, den, 0.0)
            if A == 1:
                num_acc = num_acc + diff.sum(axis=0, keepdims=True)
                den_acc = den_acc + den.sum(axis=0, keepdims=True)
            else:
                # Pure-VPU fold: vreg-aligned (A,128) slabs added elementwise.
                num_acc = num_acc + diff.reshape(rows // A, A, 128).sum(axis=0)
                den_acc = den_acc + den.reshape(rows // A, A, 128).sum(axis=0)
            return num_acc, den_acc

        def accumulate(apply_tail):
            for bl in range(Bb):
                zero = jnp.zeros((A, 128), jnp.float32)
                if NFULL > 1:
                    def body(c, carry, _bl=bl):
                        r0 = pl.multiple_of(c * CHUNK, CHUNK)
                        return slab(_bl, r0, CHUNK, apply_tail, *carry)

                    num_acc, den_acc = jax.lax.fori_loop(
                        0, NFULL, body, (zero, zero), unroll=True)
                else:
                    num_acc, den_acc = slab(bl, 0, CHUNK, apply_tail, zero, zero)
                if REM > 0:
                    num_acc, den_acc = slab(bl, NFULL * CHUNK, REM, apply_tail,
                                            num_acc, den_acc)
                acc_ref[bl, 0] += num_acc
                acc_ref[bl, 1] += den_acc

        if needs_tail:
            # Mask-free fast path for all bulk steps; masked path only at T-1.
            @pl.when(t < T - 1)
            def _bulk():
                accumulate(False)

            @pl.when(t == T - 1)
            def _tail():
                accumulate(True)
        else:
            accumulate(False)

        @pl.when(t == T - 1)
        def _finalize():
            for bl in range(Bb):
                num = jnp.sum(acc_ref[bl, 0])      # one cross-lane reduce / batch
                den_tot = jnp.sum(acc_ref[bl, 1])
                ratio = num / den_tot              # exact divide (no approx recip)
                out_ref[bl] = jnp.full((8, 128), ratio, dtype=jnp.float32)

    return kernel


def l1loss_baseline(y_hat, g_truth, mask, *, target_step_bytes=12 * 1024 * 1024):
    """Pallas equivalent of L1loss_baseline.forward. Returns a scalar f32."""
    assert y_hat.shape == g_truth.shape == mask.shape
    B, C, H, W = y_hat.shape
    n = C * H * W

    def prep(x):
        x = x.reshape(B, n)  # native dtype; no f32 upcast in the wrapper
        if n % 128 != 0:
            # TODO(synk): if n % 128 != 0 occurs in production, mask the last
            # lane block in-kernel instead of paying this extra HBM pad pass.
            x = jnp.pad(x, ((0, 0), (0, 128 - (n % 128))))
        return x.reshape(B, -1, 128)

    # NOTE: the mask keeps whatever dtype the caller provides; if it is known
    # binary it can be shipped as bf16/int8 to cut its stream further.
    y3, g3, m3 = prep(y_hat), prep(g_truth), prep(mask)
    S = y3.shape[1]  # sublane rows per batch element

    row_bytes = 128 * (y3.dtype.itemsize + g3.dtype.itemsize + m3.dtype.itemsize)
    max_rows = max(8, target_step_bytes // row_bytes)  # rows per grid step

    if S <= max_rows:
        # Whole per-batch reduction fits in one step: pack batches per block.
        S_TILE, T = S, 1
        bb_cap = int(min(B, 8, max(1, max_rows // S)))
        Bb = _largest_divisor_at_most(B, bb_cap)
    else:
        S_TILE = max(8, (max_rows // 8) * 8)
        if S_TILE >= 1024:
            S_TILE = (S_TILE // 1024) * 1024  # even in-kernel chunking
        T = -(-S // S_TILE)
        Bb = 1

    needs_tail = (S % S_TILE) != 0

    # In-kernel compute chunking (<=1024-row slabs) keeps f32 temporaries small.
    CHUNK = 1024 if S_TILE > 2048 else S_TILE
    NFULL = S_TILE // CHUNK
    REM = S_TILE - NFULL * CHUNK
    A = 1
    for cand in (32, 16, 8):
        if CHUNK % cand == 0 and (REM == 0 or REM % cand == 0):
            A = cand
            break

    blk = pl.BlockSpec((Bb, S_TILE, 128), lambda b, t: (b, t, 0))

    buf_bytes = 2 * Bb * S_TILE * 128 * (
        y3.dtype.itemsize + g3.dtype.itemsize + m3.dtype.itemsize)
    misc_bytes = 2 * Bb * 8 * 128 * 4 + Bb * 2 * A * 128 * 4
    vmem_limit = int(max(32 * 1024 * 1024, buf_bytes + misc_bytes + (6 << 20)))

    out = pl.pallas_call(
        _make_l1_masked_kernel(S, S_TILE, T, Bb, CHUNK, NFULL, REM, A, needs_tail),
        out_shape=jax.ShapeDtypeStruct((B, 8, 128), jnp.float32),
        grid_spec=pltpu.PrefetchScalarGridSpec(
            num_scalar_prefetch=0,
            grid=(B // Bb, T),
            in_specs=[blk, blk, blk],
            out_specs=pl.BlockSpec((Bb, 8, 128), lambda b, t: (b, 0, 0)),
            scratch_shapes=[pltpu.VMEM((Bb, 2, A, 128), jnp.float32)],
        ),
        compiler_params=pltpu.CompilerParams(
            dimension_semantics=("parallel", "arbitrary"),
            vmem_limit_bytes=vmem_limit,
        ),
    )(y3, g3, m3)

    # Per-batch ratio is broadcast across each (8,128) output tile; average the
    # B scalars in the wrapper (negligible).
    return jnp.mean(out[:, 0, 0])


if __name__ == "__main__":
    def ref_loss(y, g, m):
        y = y.astype(jnp.float32)
        g = g.astype(jnp.float32)
        m = m.astype(jnp.float32)
        num = jnp.sum(jnp.abs(y * m - g * m), axis=(1, 2, 3))
        den = jnp.sum(m, axis=(1, 2, 3))
        return jnp.mean(num / den)

    key = jax.random.PRNGKey(0)

    # Small shape matching the module (batch-blocked single-step path).
    k1, k2, k3 = jax.random.split(key, 3)
    B, C, H, W = 2, 4, 16, 16
    y = jax.random.normal(k1, (B, C, H, W), dtype=jnp.float32)
    g = jax.random.normal(k2, (B, C, H, W), dtype=jnp.float32)
    m = (jax.random.uniform(k3, (B, C, H, W)) > 0.3).astype(jnp.float32)

    result = l1loss_baseline(y, g, m)
    jax.block_until_ready(result)
    assert jnp.allclose(result, ref_loss(y, g, m), rtol=1e-5, atol=1e-5)

    # Same data streamed in native bf16 (half the HBM bytes; f32 accumulation).
    y_bf, g_bf, m_bf = (a.astype(jnp.bfloat16) for a in (y, g, m))
    result_bf = l1loss_baseline(y_bf, g_bf, m_bf)
    jax.block_until_ready(result_bf)
    assert jnp.allclose(result_bf, ref_loss(y_bf, g_bf, m_bf), rtol=1e-3, atol=1e-3)

    # Larger single-batch shape: exercises the chunked in-kernel loop.
    k4, k5, k6 = jax.random.split(jax.random.PRNGKey(1), 3)
    y2 = jax.random.normal(k4, (1, 8, 192, 256), dtype=jnp.float32)
    g2 = jax.random.normal(k5, (1, 8, 192, 256), dtype=jnp.float32)
    m2 = (jax.random.uniform(k6, (1, 8, 192, 256)) > 0.3).astype(jnp.float32)
    result2 = l1loss_baseline(y2, g2, m2)
    jax.block_until_ready(result2)
    assert jnp.allclose(result2, ref_loss(y2, g2, m2), rtol=1e-5, atol=1e-5)

    # Tiny step budget forces T > 1 with a ragged tail (gated tail-mask path).
    result3 = l1loss_baseline(y2, g2, m2, target_step_bytes=512 * 1024)
    jax.block_until_ready(result3)
    assert jnp.allclose(result3, ref_loss(y2, g2, m2), rtol=1e-5, atol=1e-5)

    print("KERNEL_OK")
</pallas_src>

<mosaic_0001>
module attributes {stable_mosaic.version = 11 : i64} {
  func.func @kernel(%arg0: i32, %arg1: i32, %arg2: memref<2x8x128xf32, #tpu.memory_space<vmem>>, %arg3: memref<2x8x128xf32, #tpu.memory_space<vmem>>, %arg4: memref<2x8x128xf32, #tpu.memory_space<vmem>>, %arg5: memref<2x8x128xf32, #tpu.memory_space<vmem>>, %arg6: memref<2x2x8x128xf32, #tpu.memory_space<vmem>>) attributes {dimension_semantics = [#tpu.dimension_semantics<parallel>, #tpu.dimension_semantics<arbitrary>], iteration_bounds = array<i64: 1, 1>, scalar_prefetch = 0 : i64, scratch_operands = 1 : i64, tpu.core_type = #tpu.core_type<tc>, window_params = [{transform_indices = @transform_0, window_bounds = array<i64: 2, 8, 128>}, {transform_indices = @transform_1, window_bounds = array<i64: 2, 8, 128>}, {transform_indices = @transform_2, window_bounds = array<i64: 2, 8, 128>}, {transform_indices = @transform_3, window_bounds = array<i64: 2, 8, 128>}]} {
    %c0_i32 = arith.constant 0 : i32
    %0 = arith.cmpi eq, %arg1, %c0_i32 : i32
    %1 = arith.extui %0 : i1 to i32
    %c0_i32_0 = arith.constant 0 : i32
    %2 = arith.cmpi ne, %1, %c0_i32_0 : i32
    scf.if %2 {
      %cst_56 = arith.constant 0.000000e+00 : f32
      %64 = vector.broadcast %cst_56 : f32 to vector<2x2x8x128xf32>
      %c0_57 = arith.constant 0 : index
      %c0_58 = arith.constant 0 : index
      %c0_59 = arith.constant 0 : index
      %c0_60 = arith.constant 0 : index
      %65 = vector.load %arg6[%c0_57, %c0_58, %c0_59, %c0_60] : memref<2x2x8x128xf32, #tpu.memory_space<vmem>>, vector<2x2x8x128xf32>
      tpu.vector_store %arg6[%c0_57, %c0_58, %c0_59, %c0_60], %64 {strides = array<i32>} : memref<2x2x8x128xf32, #tpu.memory_space<vmem>>, vector<2x2x8x128xf32>,
    } else {
    }
    %cst = arith.constant 0.000000e+00 : f32
    %3 = vector.broadcast %cst : f32 to vector<8x128xf32>
    %c0 = arith.constant 0 : index
    %c0_1 = arith.constant 0 : index
    %c0_2 = arith.constant 0 : index
    %4 = vector.load %arg2[%c0, %c0_1, %c0_2] : memref<2x8x128xf32, #tpu.memory_space<vmem>>, vector<1x8x128xf32>
    %5 = vector.shape_cast %4 : vector<1x8x128xf32> to vector<8x128xf32>
    %c0_3 = arith.constant 0 : index
    %c0_4 = arith.constant 0 : index
    %c0_5 = arith.constant 0 : index
    %6 = vector.load %arg3[%c0_3, %c0_4, %c0_5] : memref<2x8x128xf32, #tpu.memory_space<vmem>>, vector<1x8x128xf32>
    %7 = vector.shape_cast %6 : vector<1x8x128xf32> to vector<8x128xf32>
    %c0_6 = arith.constant 0 : index
    %c0_7 = arith.constant 0 : index
    %c0_8 = arith.constant 0 : index
    %8 = vector.load %arg4[%c0_6, %c0_7, %c0_8] : memref<2x8x128xf32, #tpu.memory_space<vmem>>, vector<1x8x128xf32>
    %9 = vector.shape_cast %8 : vector<1x8x128xf32> to vector<8x128xf32>
    %10 = arith.mulf %5, %9 : vector<8x128xf32>
    %11 = arith.mulf %7, %9 : vector<8x128xf32>
    %12 = arith.subf %10, %11 : vector<8x128xf32>
    %13 = math.absf %12 : vector<8x128xf32>
    %14 = vector.shape_cast %13 : vector<8x128xf32> to vector<1x8x128xf32>
    %cst_9 = arith.constant dense<0.000000e+00> : vector<8x128xf32>
    %15 = vector.multi_reduction <add>, %14, %cst_9 [0] : vector<1x8x128xf32> to vector<8x128xf32>
    %16 = arith.addf %3, %15 : vector<8x128xf32>
    %17 = vector.shape_cast %9 : vector<8x128xf32> to vector<1x8x128xf32>
    %cst_10 = arith.constant dense<0.000000e+00> : vector<8x128xf32>
    %18 = vector.multi_reduction <add>, %17, %cst_10 [0] : vector<1x8x128xf32> to vector<8x128xf32>
    %19 = arith.addf %3, %18 : vector<8x128xf32>
    %c0_11 = arith.constant 0 : index
    %c0_12 = arith.constant 0 : index
    %c0_13 = arith.constant 0 : index
    %c0_14 = arith.constant 0 : index
    %20 = vector.load %arg6[%c0_11, %c0_12, %c0_13, %c0_14] : memref<2x2x8x128xf32, #tpu.memory_space<vmem>>, vector<1x1x8x128xf32>
    %21 = vector.shape_cast %20 : vector<1x1x8x128xf32> to vector<8x128xf32>
    %22 = arith.addf %21, %16 : vector<8x128xf32>
    %c0_15 = arith.constant 0 : index
    %c0_16 = arith.constant 0 : index
    %c0_17 = arith.constant 0 : index
    %c0_18 = arith.constant 0 : index
    %23 = vector.load %arg6[%c0_15, %c0_16, %c0_17, %c0_18] : memref<2x2x8x128xf32, #tpu.memory_space<vmem>>, vector<1x1x8x128xf32>
    %24 = vector.shape_cast %23 : vector<1x1x8x128xf32> to vector<8x128xf32>
    %25 = vector.shape_cast %22 : vector<8x128xf32> to vector<1x1x8x128xf32>
    tpu.vector_store %arg6[%c0_15, %c0_16, %c0_17, %c0_18], %25 {strides = array<i32>} : memref<2x2x8x128xf32, #tpu.memory_space<vmem>>, vector<1x1x8x128xf32>,
    %c0_19 = arith.constant 0 : index
    %c1 = arith.constant 1 : index
    %c0_20 = arith.constant 0 : index
    %c0_21 = arith.constant 0 : index
    %26 = vector.load %arg6[%c0_19, %c1, %c0_20, %c0_21] : memref<2x2x8x128xf32, #tpu.memory_space<vmem>>, vector<1x1x8x128xf32>
    %27 = vector.shape_cast %26 : vector<1x1x8x128xf32> to vector<8x128xf32>
    %28 = arith.addf %27, %19 : vector<8x128xf32>
    %c0_22 = arith.constant 0 : index
    %c1_23 = arith.constant 1 : index
    %c0_24 = arith.constant 0 : index
    %c0_25 = arith.constant 0 : index
    %29 = vector.load %arg6[%c0_22, %c1_23, %c0_24, %c0_25] : memref<2x2x8x128xf32, #tpu.memory_space<vmem>>, vector<1x1x8x128xf32>
    %30 = vector.shape_cast %29 : vector<1x1x8x128xf32> to vector<8x128xf32>
    %31 = vector.shape_cast %28 : vector<8x128xf32> to vector<1x1x8x128xf32>
    tpu.vector_store %arg6[%c0_22, %c1_23, %c0_24, %c0_25], %31 {strides = array<i32>} : memref<2x2x8x128xf32, #tpu.memory_space<vmem>>, vector<1x1x8x128xf32>,
    %cst_26 = arith.constant 0.000000e+00 : f32
    %32 = vector.broadcast %cst_26 : f32 to vector<8x128xf32>
    %c1_27 = arith.constant 1 : index
    %c0_28 = arith.constant 0 : index
    %c0_29 = arith.constant 0 : index
    %33 = vector.load %arg2[%c1_27, %c0_28, %c0_29] : memref<2x8x128xf32, #tpu.memory_space<vmem>>, vector<1x8x128xf32>
    %34 = vector.shape_cast %33 : vector<1x8x128xf32> to vector<8x128xf32>
    %c1_30 = arith.constant 1 : index
    %c0_31 = arith.constant 0 : index
    %c0_32 = arith.constant 0 : index
    %35 = vector.load %arg3[%c1_30, %c0_31, %c0_32] : memref<2x8x128xf32, #tpu.memory_space<vmem>>, vector<1x8x128xf32>
    %36 = vector.shape_cast %35 : vector<1x8x128xf32> to vector<8x128xf32>
    %c1_33 = arith.constant 1 : index
    %c0_34 = arith.constant 0 : index
    %c0_35 = arith.constant 0 : index
    %37 = vector.load %arg4[%c1_33, %c0_34, %c0_35] : memref<2x8x128xf32, #tpu.memory_space<vmem>>, vector<1x8x128xf32>
    %38 = vector.shape_cast %37 : vector<1x8x128xf32> to vector<8x128xf32>
    %39 = arith.mulf %34, %38 : vector<8x128xf32>
    %40 = arith.mulf %36, %38 : vector<8x128xf32>
    %41 = arith.subf %39, %40 : vector<8x128xf32>
    %42 = math.absf %41 : vector<8x128xf32>
    %43 = vector.shape_cast %42 : vector<8x128xf32> to vector<1x8x128xf32>
    %cst_36 = arith.constant dense<0.000000e+00> : vector<8x128xf32>
    %44 = vector.multi_reduction <add>, %43, %cst_36 [0] : vector<1x8x128xf32> to vector<8x128xf32>
    %45 = arith.addf %32, %44 : vector<8x128xf32>
    %46 = vector.shape_cast %38 : vector<8x128xf32> to vector<1x8x128xf32>
    %cst_37 = arith.constant dense<0.000000e+00> : vector<8x128xf32>
    %47 = vector.multi_reduction <add>, %46, %cst_37 [0] : vector<1x8x128xf32> to vector<8x128xf32>
    %48 = arith.addf %32, %47 : vector<8x128xf32>
    %c1_38 = arith.constant 1 : index
    %c0_39 = arith.constant 0 : index
    %c0_40 = arith.constant 0 : index
    %c0_41 = arith.constant 0 : index
    %49 = vector.load %arg6[%c1_38, %c0_39, %c0_40, %c0_41] : memref<2x2x8x128xf32, #tpu.memory_space<vmem>>, vector<1x1x8x128xf32>
    %50 = vector.shape_cast %49 : vector<1x1x8x128xf32> to vector<8x128xf32>
    %51 = arith.addf %50, %45 : vector<8x128xf32>
    %c1_42 = arith.constant 1 : index
    %c0_43 = arith.constant 0 : index
    %c0_44 = arith.constant 0 : index
    %c0_45 = arith.constant 0 : index
    %52 = vector.load %arg6[%c1_42, %c0_43, %c0_44, %c0_45] : memref<2x2x8x128xf32, #tpu.memory_space<vmem>>, vector<1x1x8x128xf32>
    %53 = vector.shape_cast %52 : vector<1x1x8x128xf32> to vector<8x128xf32>
    %54 = vector.shape_cast %51 : vector<8x128xf32> to vector<1x1x8x128xf32>
    tpu.vector_store %arg6[%c1_42, %c0_43, %c0_44, %c0_45], %54 {strides = array<i32>} : memref<2x2x8x128xf32, #tpu.memory_space<vmem>>, vector<1x1x8x128xf32>,
    %c1_46 = arith.constant 1 : index
    %c1_47 = arith.constant 1 : index
    %c0_48 = arith.constant 0 : index
    %c0_49 = arith.constant 0 : index
    %55 = vector.load %arg6[%c1_46, %c1_47, %c0_48, %c0_49] : memref<2x2x8x128xf32, #tpu.memory_space<vmem>>, vector<1x1x8x128xf32>
    %56 = vector.shape_cast %55 : vector<1x1x8x128xf32> to vector<8x128xf32>
    %57 = arith.addf %56, %48 : vector<8x128xf32>
    %c1_50 = arith.constant 1 : index
    %c1_51 = arith.constant 1 : index
    %c0_52 = arith.constant 0 : index
    %c0_53 = arith.constant 0 : index
    %58 = vector.load %arg6[%c1_50, %c1_51, %c0_52, %c0_53] : memref<2x2x8x128xf32, #tpu.memory_space<vmem>>, vector<1x1x8x128xf32>
    %59 = vector.shape_cast %58 : vector<1x1x8x128xf32> to vector<8x128xf32>
    %60 = vector.shape_cast %57 : vector<8x128xf32> to vector<1x1x8x128xf32>
    tpu.vector_store %arg6[%c1_50, %c1_51, %c0_52, %c0_53], %60 {strides = array<i32>} : memref<2x2x8x128xf32, #tpu.memory_space<vmem>>, vector<1x1x8x128xf32>,
    %c0_i32_54 = arith.constant 0 : i32
    %61 = arith.cmpi eq, %arg1, %c0_i32_54 : i32
    %62 = arith.extui %61 : i1 to i32
    %c0_i32_55 = arith.constant 0 : i32
    %63 = arith.cmpi ne, %62, %c0_i32_55 : i32
    scf.if %63 {
      %c0_56 = arith.constant 0 : index
      %c0_57 = arith.constant 0 : index
      %c0_58 = arith.constant 0 : index
      %c0_59 = arith.constant 0 : index
      %64 = vector.load %arg6[%c0_56, %c0_57, %c0_58, %c0_59] : memref<2x2x8x128xf32, #tpu.memory_space<vmem>>, vector<1x1x8x128xf32>
      %65 = vector.shape_cast %64 : vector<1x1x8x128xf32> to vector<8x128xf32>
      %66 = vector.shape_cast %65 : vector<8x128xf32> to vector<1x8x128xf32>
      %cst_60 = arith.constant dense<0.000000e+00> : vector<1xf32>
      %67 = vector.multi_reduction <add>, %66, %cst_60 [1, 2] : vector<1x8x128xf32> to vector<1xf32>
      %68 = vector.shape_cast %67 : vector<1xf32> to vector<1x1x1xf32>
      %69 = vector.extract %68[0, 0, 0] : f32 from vector<1x1x1xf32>
      %c0_61 = arith.constant 0 : index
      %c1_62 = arith.constant 1 : index
      %c0_63 = arith.constant 0 : index
      %c0_64 = arith.constant 0 : index
      %70 = vector.load %arg6[%c0_61, %c1_62, %c0_63, %c0_64] : memref<2x2x8x128xf32, #tpu.memory_space<vmem>>, vector<1x1x8x128xf32>
      %71 = vector.shape_cast %70 : vector<1x1x8x128xf32> to vector<8x128xf32>
      %72 = vector.shape_cast %71 : vector<8x128xf32> to vector<1x8x128xf32>
      %cst_65 = arith.constant dense<0.000000e+00> : vector<1xf32>
      %73 = vector.multi_reduction <add>, %72, %cst_65 [1, 2] : vector<1x8x128xf32> to vector<1xf32>
      %74 = vector.shape_cast %73 : vector<1xf32> to vector<1x1x1xf32>
      %75 = vector.extract %74[0, 0, 0] : f32 from vector<1x1x1xf32>
      %76 = arith.divf %69, %75 : f32
      %77 = vector.broadcast %76 : f32 to vector<8x128xf32>
      %c0_66 = arith.constant 0 : index
      %c0_67 = arith.constant 0 : index
      %c0_68 = arith.constant 0 : index
      %78 = vector.load %arg5[%c0_66, %c0_67, %c0_68] : memref<2x8x128xf32, #tpu.memory_space<vmem>>, vector<1x8x128xf32>
      %79 = vector.shape_cast %78 : vector<1x8x128xf32> to vector<8x128xf32>
      %80 = vector.shape_cast %77 : vector<8x128xf32> to vector<1x8x128xf32>
      tpu.vector_store %arg5[%c0_66, %c0_67, %c0_68], %80 {strides = array<i32>} : memref<2x8x128xf32, #tpu.memory_space<vmem>>, vector<1x8x128xf32>,
      %c1_69 = arith.constant 1 : index
      %c0_70 = arith.constant 0 : index
      %c0_71 = arith.constant 0 : index
      %c0_72 = arith.constant 0 : index
      %81 = vector.load %arg6[%c1_69, %c0_70, %c0_71, %c0_72] : memref<2x2x8x128xf32, #tpu.memory_space<vmem>>, vector<1x1x8x128xf32>
      %82 = vector.shape_cast %81 : vector<1x1x8x128xf32> to vector<8x128xf32>
      %83 = vector.shape_cast %82 : vector<8x128xf32> to vector<1x8x128xf32>
      %cst_73 = arith.constant dense<0.000000e+00> : vector<1xf32>
      %84 = vector.multi_reduction <add>, %83, %cst_73 [1, 2] : vector<1x8x128xf32> to vector<1xf32>
      %85 = vector.shape_cast %84 : vector<1xf32> to vector<1x1x1xf32>
      %86 = vector.extract %85[0, 0, 0] : f32 from vector<1x1x1xf32>
      %c1_74 = arith.constant 1 : index
      %c1_75 = arith.constant 1 : index
      %c0_76 = arith.constant 0 : index
      %c0_77 = arith.constant 0 : index
      %87 = vector.load %arg6[%c1_74, %c1_75, %c0_76, %c0_77] : memref<2x2x8x128xf32, #tpu.memory_space<vmem>>, vector<1x1x8x128xf32>
      %88 = vector.shape_cast %87 : vector<1x1x8x128xf32> to vector<8x128xf32>
      %89 = vector.shape_cast %88 : vector<8x128xf32> to vector<1x8x128xf32>
      %cst_78 = arith.constant dense<0.000000e+00> : vector<1xf32>
      %90 = vector.multi_reduction <add>, %89, %cst_78 [1, 2] : vector<1x8x128xf32> to vector<1xf32>
      %91 = vector.shape_cast %90 : vector<1xf32> to vector<1x1x1xf32>
      %92 = vector.extract %91[0, 0, 0] : f32 from vector<1x1x1xf32>
      %93 = arith.divf %86, %92 : f32
      %94 = vector.broadcast %93 : f32 to vector<8x128xf32>
      %c1_79 = arith.constant 1 : index
      %c0_80 = arith.constant 0 : index
      %c0_81 = arith.constant 0 : index
      %95 = vector.load %arg5[%c1_79, %c0_80, %c0_81] : memref<2x8x128xf32, #tpu.memory_space<vmem>>, vector<1x8x128xf32>
      %96 = vector.shape_cast %95 : vector<1x8x128xf32> to vector<8x128xf32>
      %97 = vector.shape_cast %94 : vector<8x128xf32> to vector<1x8x128xf32>
      tpu.vector_store %arg5[%c1_79, %c0_80, %c0_81], %97 {strides = array<i32>} : memref<2x8x128xf32, #tpu.memory_space<vmem>>, vector<1x8x128xf32>,
    } else {
    }
    return
  }
  func.func @transform_0(%arg0: i32, %arg1: i32) -> (i32, i32, i32) {
    %c0_i32 = arith.constant 0 : i32
    %c0_i32_0 = arith.constant 0 : i32
    return %arg0, %arg1, %c0_i32 : i32, i32, i32
  }
  func.func @transform_1(%arg0: i32, %arg1: i32) -> (i32, i32, i32) {
    %c0_i32 = arith.constant 0 : i32
    %c0_i32_0 = arith.constant 0 : i32
    return %arg0, %arg1, %c0_i32 : i32, i32, i32
  }
  func.func @transform_2(%arg0: i32, %arg1: i32) -> (i32, i32, i32) {
    %c0_i32 = arith.constant 0 : i32
    %c0_i32_0 = arith.constant 0 : i32
    return %arg0, %arg1, %c0_i32 : i32, i32, i32
  }
  func.func @transform_3(%arg0: i32, %arg1: i32) -> (i32, i32, i32) {
    %c0_i32 = arith.constant 0 : i32
    %c0_i32_0 = arith.constant 0 : i32
    %c0_i32_1 = arith.constant 0 : i32
    return %arg0, %c0_i32, %c0_i32_0 : i32, i32, i32
  }
}

</mosaic_0001>

<bundles_post_ra>
// kernel: tpu_custom_call.1
= control target key start
LH: loop header
LB: loop body
LE: loop exit
PB: predicated region body
PF: predicated region fallthrough
CT: control target
= control target key end

     0   :  { %8 = vsyncpa [#allocation4], 0  ;;  %s387_s0 = inlined_call_operand.hbm [shape: f32[2,8,128], index: 0, kind: input, shape index: {}]   ;;  %s388_s1 = inlined_call_operand.hbm [shape: f32[2,8,128], index: 1, kind: input, shape index: {}]   ;;  %s389_s2 = inlined_call_operand.hbm [shape: f32[2,8,128], index: 2, kind: input, shape index: {}]   ;;  %s390_s3 = inlined_call_operand.hbm [shape: f32[2,8,128], index: 3, kind: output, shape index: {}]  }
   0x1   :  { %9 = vsyncpa [#allocation7], 0 }
   0x2   :  { %10 = vsyncpa [#allocation5], 0  ;;  %s294_s12 = smov [#allocation6]   ;;  %s295_s14 = smov [#allocation3]  }
   0x3   :  { %s28_s13 = sshll.u32 %s294_s12, 4  ;;  %s16_s15 = sshll.u32 %s295_s14, 4  ;;  %s29_s13 = int_to_ptr.vmem [resolvable:$true] %s28_s13  ;;  %s320_s15 = int_to_ptr.vmem [resolvable:$true] %s16_s15 }
   0x4   :  { %s200_s18 = scalar_lea.hbm %s388_s1, 256 }
   0x5   :  { %p201_p0 = scmp.ne.s32.totalorder %s388_s1, %s200_s18  ;;  %p204_p1 = scmp.lt.u32.totalorder %s200_s18, %s388_s1 }
   0x7   :  { %p206_p2 = pnand %p204_p1, %p201_p0 }
   0x9   :  { %209 = shalt.err (!%p206_p2)
}
   0xa   :  { %s210_s23 = scalar_lea.vmem %s29_s13, 256  ;;  %p215_p4 = scmp.lt.s32.totalorder %s29_s13, %s29_s13 }
   0xb   :  { %p211_p3 = scmp.ne.s32.totalorder %s29_s13, %s210_s23  ;;  %p216_p5 = scmp.lt.s32.totalorder %s210_s23, %s210_s23 }
   0xd   :  { %p217_p6 = por %p216_p5, %p215_p4 }
   0xf   :  { %p218_p7 = pnand %p217_p6, %p211_p3 }
  0x11   :  { %221 = shalt.err (!%p218_p7)
}
  0x12   :  { %s296_s24 = smov 128   ;;  %s297_s25 = smov 8  }
  0x13   :  { %34 = dma.hbm_to_vmem [thread:$0]  %s388_s1, 256, %s29_s13, [#allocation7], %s296_s24, %s296_s24, %s297_s25  }
  0x14   :  { %s222_s30 = scalar_lea.hbm %s387_s0, 256 }
  0x15   :  { %p223_p8 = scmp.ne.s32.totalorder %s387_s0, %s222_s30  ;;  %p226_p9 = scmp.lt.u32.totalorder %s222_s30, %s387_s0 }
  0x17   :  { %p228_p10 = pnand %p226_p9, %p223_p8 }
  0x19   :  { %231 = shalt.err (!%p228_p10)
}
  0x1a   :  { %s232_s8 = scalar_lea.vmem %s320_s15, 256  ;;  %p237_p12 = scmp.lt.s32.totalorder %s320_s15, %s320_s15 }
  0x1b   :  { %p233_p11 = scmp.ne.s32.totalorder %s320_s15, %s232_s8  ;;  %p238_p13 = scmp.lt.s32.totalorder %s232_s8, %s232_s8 }
  0x1d   :  { %p239_p0 = por %p238_p13, %p237_p12 }
  0x1f   :  { %p240_p1 = pnand %p239_p0, %p233_p11 }
  0x21   :  { %243 = shalt.err (!%p240_p1)
}
  0x22   :  { %22 = dma.hbm_to_vmem [thread:$0]  %s387_s0, 256, %s320_s15, [#allocation4], %s296_s24, %s296_s24, %s297_s25  }
  0x23   :  { %s298_s10 = smov [#allocation8]   ;;  %s244_s14 = scalar_lea.hbm %s389_s2, 256 }
  0x24   :  { %s40_s11 = sshll.u32 %s298_s10, 4  ;;  %p245_p2 = scmp.ne.s32.totalorder %s389_s2, %s244_s14  ;;  %s41_s11 = int_to_ptr.vmem [resolvable:$true] %s40_s11 }
  0x25   :  { %p248_p3 = scmp.lt.u32.totalorder %s244_s14, %s389_s2 }
  0x27   :  { %p250_p4 = pnand %p248_p3, %p245_p2 }
  0x29   :  { %253 = shalt.err (!%p250_p4)
}
  0x2a   :  { %s254_s20 = scalar_lea.vmem %s41_s11, 256  ;;  %p259_p6 = scmp.lt.s32.totalorder %s41_s11, %s41_s11 }
  0x2b   :  { %p255_p5 = scmp.ne.s32.totalorder %s41_s11, %s254_s20  ;;  %p260_p7 = scmp.lt.s32.totalorder %s254_s20, %s254_s20 }
  0x2d   :  { %p261_p8 = por %p260_p7, %p259_p6 }
  0x2f   :  { %p262_p9 = pnand %p261_p8, %p255_p5 }
  0x31   :  { %265 = shalt.err (!%p262_p9)
}
  0x32   :  { %46 = dma.hbm_to_vmem [thread:$0]  %s389_s2, 256, %s41_s11, [#allocation7], %s296_s24, %s296_s24, %s297_s25  }
  0x33   :  { %288 = dma.done.wait [#allocation4], 256  }
  0x34   :  { %289 = vsyncadd [#allocation4], 4294967040 }
  0x35   :  { %290 = dma.done.wait [#allocation7], 512  }
  0x36   :  { %291 = vsyncadd [#allocation7], 4294966784  ;;  %v64_v0 = vld [vmem:[#allocation3] sm:$0xff]  ;;  %v65_v1 = vld [vmem:[#allocation6] sm:$0xff]  ;;  %s299_s28 = smov [#allocation9]  }
  0x37   :  { %v66_v2 = vld [vmem:[#allocation8] sm:$0xff]  ;;  %v83_v5 = vld [vmem:[#allocation3 + $0x8] sm:$0xff]  ;;  %v85_v6 = vld [vmem:[#allocation6 + $0x8] sm:$0xff]  ;;  %s165_s29 = sshll.u32 %s299_s28, 4  ;;  %s166_s29 = int_to_ptr.vmem [resolvable:$true] %s165_s29 }
  0x38   :  { %v67_v3 = vmul.f32 %v66_v2, %v64_v0  ;;  %v68_v4 = vmul.f32 %v66_v2, %v65_v1  ;;  %v87_v7 = vld [vmem:[#allocation8 + $0x8] sm:$0xff]  ;;  %s266_s5 = scalar_lea.vmem %s166_s29, 256  ;;  %p271_p11 = scmp.lt.s32.totalorder %s166_s29, %s166_s29 }
  0x39   :  { %v88_v8 = vmul.f32 %v87_v7, %v83_v5  ;;  %v89_v9 = vmul.f32 %v87_v7, %v85_v6  ;;  %p267_p10 = scmp.ne.s32.totalorder %s166_s29, %s266_s5  ;;  %p272_p12 = scmp.lt.s32.totalorder %s266_s5, %s266_s5 }
  0x3a   :  { %v69_v10 = vsub.f32 %v67_v3, %v68_v4 }
  0x3b   :  { %v90_v11 = vsub.f32 %v88_v8, %v89_v9  ;;  %p273_p13 = por %p272_p12, %p271_p11 }
  0x3c   :  { %v70_v12 = vand.u32 2147483647, %v69_v10 }
  0x3d   :  { %v91_v13 = vand.u32 2147483647, %v90_v11  ;;  %p274_p0 = pnand %p273_p13, %p267_p10 }
  0x3e   :  { %108 = vadd.xlane.f32.xlu0 %v70_v12 }
  0x3f   :  { %134 = vadd.xlane.f32.xlu1 %v91_v13 }
  0x42   :  { %118 = vadd.xlane.f32.xlu0 %v66_v2 }
  0x43   :  { %144 = vadd.xlane.f32.xlu1 %v87_v7 }
  0xcb   :  { %v109_v14 = vpop.xlane.xlu0 %108 }
  0xcc   :  { %v110_v15 = vrot.slane %v109_v14, 4  ;;  %v135_v28 = vpop.xlane.xlu1 %134 }
  0xcd   :  { %v136_v30 = vrot.slane %v135_v28, 4 }
  0xce   :  { %v111_v16 = vadd.f32 %v110_v15, %v109_v14 }
  0xcf   :  { %v119_v17 = vpop.xlane.xlu0 %118  ;;  %v137_v32 = vadd.f32 %v136_v30, %v135_v28 }
  0xd0   :  { %v112_v18 = vrot.slane %v111_v16, 2  ;;  %v120_v19 = vrot.slane %v119_v17, 4  ;;  %v145_v29 = vpop.xlane.xlu1 %144 }
  0xd1   :  { %v146_v31 = vrot.slane %v145_v29, 4  ;;  %v138_v34 = vrot.slane %v137_v32, 2 }
  0xd2   :  { %v121_v20 = vadd.f32 %v120_v19, %v119_v17  ;;  %v113_v21 = vadd.f32 %v112_v18, %v111_v16 }
  0xd3   :  { %v147_v33 = vadd.f32 %v146_v31, %v145_v29  ;;  %v139_v37 = vadd.f32 %v138_v34, %v137_v32 }
  0xd4   :  { %v122_v22 = vrot.slane %v121_v20, 2  ;;  %v114_v23 = vrot.slane %v113_v21, 1 }
  0xd5   :  { %v148_v35 = vrot.slane %v147_v33, 2  ;;  %v140_v39 = vrot.slane %v139_v37, 1 }
  0xd6   :  { %v123_v24 = vadd.f32 %v122_v22, %v121_v20  ;;  %v115_v25 = vadd.f32 %v114_v23, %v113_v21 }
  0xd7   :  { %v149_v38 = vadd.f32 %v148_v35, %v147_v33  ;;  %v141_v42 = vadd.f32 %v140_v39, %v139_v37 }
  0xd8   :  { %178 = vpush %v115_v25  ;;  %v124_v26 = vrot.slane %v123_v24, 1 }
  0xd9   :  { %v150_v40 = vrot.slane %v149_v38, 1 }
  0xda   :  { %v125_v27 = vadd.f32 %v124_v26, %v123_v24 }
  0xdb   :  { %v151_v43 = vadd.f32 %v150_v40, %v149_v38 }
  0xdc   :  { %180 = vpush %v125_v27 }
 0x109   :  { %s179_s2 = spop %178 }
 0x10d   :  { %s181_s21 = spop %180 }
 0x10e   :  { %v127_v36 = vstv %s181_s21 }
 0x10f   :  { %196 = vrcp.f32 %v127_v36 }
 0x119   :  { %v197_v41 = vpop.eup %196 }
 0x11a   :  { %182 = vpush %v197_v41 }
 0x11b   :  { %184 = vpush %v141_v42 }
 0x11c   :  { %186 = vpush %v151_v43 }
 0x14b   :  { %s183_s22 = spop %182 }
 0x14c   :  { %s130_s23 = smul.f32 %s183_s22, %s179_s2  ;;  %s185_s26 = spop %184 }
 0x14d   :  { %s187_s27 = spop %186 }
 0x14e   :  { %v131_v44 = vstv %s130_s23  ;;  %v153_v45 = vstv %s187_s27 }
 0x14f   :  { %132 = vst [vmem:[#allocation9] sm:$0xff] %v131_v44  ;;  %198 = vrcp.f32 %v153_v45 }
 0x159   :  { %v199_v46 = vpop.eup %198 }
 0x15a   :  { %188 = vpush %v199_v46 }
 0x18b   :  { %s189_s30 = spop %188 }
 0x18c   :  { %s156_s4 = smul.f32 %s189_s30, %s185_s26 }
 0x18e   :  { %v157_v47 = vstv %s156_s4 }
 0x18f   :  { %159 = vst [vmem:[#allocation9 + $0x8] sm:$0xff] %v157_v47 }
 0x190   :  { %277 = shalt.err (!%p274_p0)
}
 0x191   :  { %s278_s8 = scalar_lea.hbm %s390_s3, 256 }
 0x192   :  { %p279_p1 = scmp.ne.s32.totalorder %s390_s3, %s278_s8  ;;  %p282_p2 = scmp.lt.u32.totalorder %s278_s8, %s390_s3 }
 0x194   :  { %p284_p3 = pnand %p282_p2, %p279_p1 }
 0x196   :  { %287 = shalt.err (!%p284_p3)
}
 0x197   :  { %171 = dma.vmem_to_hbm [thread:$0]  %s166_s29, 256, %s390_s3, [#allocation5], %s296_s24, %s296_s24, %s297_s25  }
 0x198   :  { %292 = dma.done.wait [#allocation5], 256  }
 0x199   :  { %293 = vsyncadd [#allocation5], 4294967040 }
 0x19a   :  { %175 = vsyncpa [#allocation4], 1 }
 0x19b   :  { %176 = vsyncpa [#allocation7], 1 }
 0x19c   :  { %177 = vsyncpa [#allocation5], 1 }

</bundles_post_ra>
